<compile_context>
chip_gen: v5e
topology: v5e:2x2
jax: 0.10.0
libtpu: 0.0.40
codegen_flags: <defaults>
</compile_context>

<pallas_src>
import numpy as np
import jax
import jax.numpy as jnp
from jax.experimental import pallas as pl
from jax.experimental.pallas import tpu as pltpu


# ---------------------------------------------------------------------------
# Reference weight (only used for the correctness check in __main__).
# ---------------------------------------------------------------------------
def build_unpool_weight(pooling_list, channels_per_edge, dtype=jnp.float32):
    input_edge_num = len(pooling_list)
    output_edge_num = sum(len(t) for t in pooling_list)
    w = np.zeros(
        (output_edge_num * channels_per_edge, input_edge_num * channels_per_edge),
        dtype=np.float32,
    )
    for i, pair in enumerate(pooling_list):
        for j in pair:
            for c in range(channels_per_edge):
                w[j * channels_per_edge + c, i * channels_per_edge + c] = 1.0
    return jnp.asarray(w, dtype=dtype)


# ---------------------------------------------------------------------------
# Static channel-copy plan.
# ---------------------------------------------------------------------------
def _source_channel_map(pooling_list, channels_per_edge):
    """For each output channel, the input channel it copies from (static)."""
    out_edge_num = sum(len(t) for t in pooling_list)
    src_edge = [-1] * out_edge_num
    for i, pair in enumerate(pooling_list):
        for j in pair:
            assert src_edge[j] == -1, "each output edge must have exactly one source"
            src_edge[j] = i
    assert all(s >= 0 for s in src_edge), "every output edge needs a source"
    cpe = channels_per_edge
    src_ch = []
    for j in range(out_edge_num):
        base = src_edge[j] * cpe
        src_ch.extend(range(base, base + cpe))
    return src_ch


def _copy_runs(src_ch):
    """Fuse output channels with consecutive sources into (out, src, len) runs."""
    runs = []
    o_start, s_start, length = 0, src_ch[0], 1
    for o in range(1, len(src_ch)):
        if src_ch[o] == src_ch[o - 1] + 1:
            length += 1
        else:
            runs.append((o_start, s_start, length))
            o_start, s_start, length = o, src_ch[o], 1
    runs.append((o_start, s_start, length))
    return tuple(runs)


def _make_unpool_kernel(copy_runs, squeeze_batch):
    """Statically unrolled sublane slice copies (no weight, no MXU)."""
    if squeeze_batch:
        def kernel(x_ref, o_ref):
            # x_ref: (C_in, TT), o_ref: (C_out, TT)
            for o_start, s_start, length in copy_runs:
                o_ref[pl.ds(o_start, length), :] = x_ref[pl.ds(s_start, length), :]
    else:
        def kernel(x_ref, o_ref):
            # x_ref: (BB, C_in, TT), o_ref: (BB, C_out, TT)
            for o_start, s_start, length in copy_runs:
                o_ref[:, pl.ds(o_start, length), :] = (
                    x_ref[:, pl.ds(s_start, length), :]
                )
    return kernel


# ---------------------------------------------------------------------------
# Tile sizing: bytes-per-step driven, capped by a generation-safe VMEM budget.
# ---------------------------------------------------------------------------
_TARGET_BYTES_PER_STEP = 2 << 20     # ~2 MiB/step: amortizes ~0.35 us step cost
_VMEM_FOOTPRINT_CAP = 16 << 20       # double-buffered in+out blocks (<= 50% of limit)
_VMEM_LIMIT_BYTES = 32 << 20         # explicit scoped limit: safe on v5e/v6e/v7x


def _choose_tiles(b, c_in, c_out, t_pad, itemsize):
    """Pick (batch_block, time_tile). t_pad is a multiple of 128."""
    bytes_per_col = (c_in + c_out) * itemsize   # HBM bytes per (batch, time-col)
    n128 = t_pad // 128
    tt_cands = sorted(128 * d for d in range(1, n128 + 1) if n128 % d == 0)

    # Largest lane-dense time tile whose (bb=1) double-buffered footprint fits.
    max_tt = max(128, (_VMEM_FOOTPRINT_CAP // (2 * bytes_per_col) // 128) * 128)
    tt = 128
    for cand in tt_cands:
        if cand <= max_tt:
            tt = cand

    # If the whole (padded) time axis fits in one block, grow the batch block
    # until bytes/step reaches the target (or the VMEM budget / B is hit).
    bb = 1
    if tt == t_pad:
        for cand in range(1, b + 1):
            if b % cand != 0:
                continue
            if 2 * cand * tt * bytes_per_col > _VMEM_FOOTPRINT_CAP:
                break
            bb = cand
            if cand * tt * bytes_per_col >= _TARGET_BYTES_PER_STEP:
                break
    return bb, tt


# ---------------------------------------------------------------------------
# Public wrapper.
# ---------------------------------------------------------------------------
def skeleton_unpool(x, pooling_list, channels_per_edge):
    """out[b] = W @ x[b] with W the fixed unpool selector (done as copies)."""
    b, c_in, t = x.shape
    cpe = channels_per_edge
    assert c_in == len(pooling_list) * cpe, "channel mismatch"
    c_out = sum(len(p) for p in pooling_list) * cpe
    itemsize = jnp.dtype(x.dtype).itemsize

    runs = _copy_runs(_source_channel_map(pooling_list, cpe))

    # Ragged T: pad up to a multiple of 128 so every time tile is lane-dense
    # (unmasked 128-wide stores), then slice the result back.
    t_pad = ((t + 127) // 128) * 128
    if t_pad != t:
        x_in = jnp.pad(x, ((0, 0), (0, 0), (0, t_pad - t)))
    else:
        x_in = x

    bb, tt = _choose_tiles(b, c_in, c_out, t_pad, itemsize)
    grid = (b // bb, t_pad // tt)
    squeeze_batch = bb == 1

    if squeeze_batch:
        in_spec = pl.BlockSpec((None, c_in, tt), lambda bi, ti: (bi, 0, ti))
        out_spec = pl.BlockSpec((None, c_out, tt), lambda bi, ti: (bi, 0, ti))
    else:
        in_spec = pl.BlockSpec((bb, c_in, tt), lambda bi, ti: (bi, 0, ti))
        out_spec = pl.BlockSpec((bb, c_out, tt), lambda bi, ti: (bi, 0, ti))

    cost = pl.CostEstimate(
        flops=0,
        transcendentals=0,
        bytes_accessed=b * (c_in + c_out) * t_pad * itemsize,
    )

    out_pad = pl.pallas_call(
        _make_unpool_kernel(runs, squeeze_batch),
        out_shape=jax.ShapeDtypeStruct((b, c_out, t_pad), x.dtype),
        grid=grid,
        in_specs=[in_spec],
        out_specs=out_spec,
        cost_estimate=cost,
        compiler_params=pltpu.CompilerParams(
            dimension_semantics=("parallel", "parallel"),
            vmem_limit_bytes=_VMEM_LIMIT_BYTES,
        ),
    )(x_in)

    if t_pad != t:
        out_pad = out_pad[:, :, :t]
    return out_pad


if __name__ == "__main__":
    # Small, deterministic configuration consistent with SkeletonUnpool.__init__
    pooling_list = [(0, 1), (2,), (3, 4, 5)]   # in_edge_num=3, out_edge_num=6
    channels_per_edge = 4
    batch = 2
    seq = 16

    in_edge_num = len(pooling_list)
    out_edge_num = sum(len(t) for t in pooling_list)
    c_in = in_edge_num * channels_per_edge     # 12
    c_out = out_edge_num * channels_per_edge   # 24

    key = jax.random.PRNGKey(0)
    x = jax.random.normal(key, (batch, c_in, seq), dtype=jnp.float32)

    out = skeleton_unpool(x, pooling_list, channels_per_edge)
    out = jax.block_until_ready(out)

    # Reference check: same semantics as torch.matmul(W, x)
    weight = build_unpool_weight(pooling_list, channels_per_edge)
    ref = jnp.einsum("oc,bct->bot", weight, x)
    assert out.shape == (batch, c_out, seq)
    np.testing.assert_allclose(np.asarray(out), np.asarray(ref), rtol=1e-6, atol=1e-6)

    print("KERNEL_OK")
</pallas_src>

<mosaic_0001>
module attributes {stable_mosaic.version = 11 : i64} {
  func.func @kernel(%arg0: i32, %arg1: i32, %arg2: memref<2x12x128xf32, #tpu.memory_space<vmem>>, %arg3: memref<2x24x128xf32, #tpu.memory_space<vmem>>) attributes {dimension_semantics = [#tpu.dimension_semantics<parallel>, #tpu.dimension_semantics<parallel>], iteration_bounds = array<i64: 1, 1>, scalar_prefetch = 0 : i64, scratch_operands = 0 : i64, tpu.core_type = #tpu.core_type<tc>, window_params = [{transform_indices = @transform_0, window_bounds = array<i64: 2, 12, 128>}, {transform_indices = @transform_1, window_bounds = array<i64: 2, 24, 128>}]} {
    %c0 = arith.constant 0 : index
    %c0_0 = arith.constant 0 : index
    %c0_1 = arith.constant 0 : index
    %0 = vector.load %arg2[%c0, %c0_0, %c0_1] : memref<2x12x128xf32, #tpu.memory_space<vmem>>, vector<2x4x128xf32>
    %c0_2 = arith.constant 0 : index
    %c0_3 = arith.constant 0 : index
    %c0_4 = arith.constant 0 : index
    %1 = vector.load %arg3[%c0_2, %c0_3, %c0_4] : memref<2x24x128xf32, #tpu.memory_space<vmem>>, vector<2x4x128xf32>
    tpu.vector_store %arg3[%c0_2, %c0_3, %c0_4], %0 {strides = array<i32>} : memref<2x24x128xf32, #tpu.memory_space<vmem>>, vector<2x4x128xf32>,
    %c0_5 = arith.constant 0 : index
    %c0_6 = arith.constant 0 : index
    %c0_7 = arith.constant 0 : index
    %2 = vector.load %arg2[%c0_5, %c0_6, %c0_7] : memref<2x12x128xf32, #tpu.memory_space<vmem>>, vector<2x12x128xf32>
    %c0_8 = arith.constant 0 : index
    %c4 = arith.constant 4 : index
    %c0_9 = arith.constant 0 : index
    %3 = vector.load %arg3[%c0_8, %c4, %c0_9] : memref<2x24x128xf32, #tpu.memory_space<vmem>>, vector<2x12x128xf32>
    tpu.vector_store %arg3[%c0_8, %c4, %c0_9], %2 {strides = array<i32>} : memref<2x24x128xf32, #tpu.memory_space<vmem>>, vector<2x12x128xf32>,
    %c0_10 = arith.constant 0 : index
    %c8 = arith.constant 8 : index
    %c0_11 = arith.constant 0 : index
    %4 = vector.load %arg2[%c0_10, %c8, %c0_11] : memref<2x12x128xf32, #tpu.memory_space<vmem>>, vector<2x4x128xf32>
    %c0_12 = arith.constant 0 : index
    %c16 = arith.constant 16 : index
    %c0_13 = arith.constant 0 : index
    %5 = vector.load %arg3[%c0_12, %c16, %c0_13] : memref<2x24x128xf32, #tpu.memory_space<vmem>>, vector<2x4x128xf32>
    tpu.vector_store %arg3[%c0_12, %c16, %c0_13], %4 {strides = array<i32>} : memref<2x24x128xf32, #tpu.memory_space<vmem>>, vector<2x4x128xf32>,
    %c0_14 = arith.constant 0 : index
    %c8_15 = arith.constant 8 : index
    %c0_16 = arith.constant 0 : index
    %6 = vector.load %arg2[%c0_14, %c8_15, %c0_16] : memref<2x12x128xf32, #tpu.memory_space<vmem>>, vector<2x4x128xf32>
    %c0_17 = arith.constant 0 : index
    %c20 = arith.constant 20 : index
    %c0_18 = arith.constant 0 : index
    %7 = vector.load %arg3[%c0_17, %c20, %c0_18] : memref<2x24x128xf32, #tpu.memory_space<vmem>>, vector<2x4x128xf32>
    tpu.vector_store %arg3[%c0_17, %c20, %c0_18], %6 {strides = array<i32>} : memref<2x24x128xf32, #tpu.memory_space<vmem>>, vector<2x4x128xf32>,
    return
  }
  func.func @transform_0(%arg0: i32, %arg1: i32) -> (i32, i32, i32) {
    %c0_i32 = arith.constant 0 : i32
    %c0_i32_0 = arith.constant 0 : i32
    return %arg0, %c0_i32, %arg1 : i32, i32, i32
  }
  func.func @transform_1(%arg0: i32, %arg1: i32) -> (i32, i32, i32) {
    %c0_i32 = arith.constant 0 : i32
    %c0_i32_0 = arith.constant 0 : i32
    return %arg0, %c0_i32, %arg1 : i32, i32, i32
  }
}

</mosaic_0001>

<bundles_post_ra>
// kernel: tpu_custom_call.1
= control target key start
LH: loop header
LB: loop body
LE: loop exit
PB: predicated region body
PF: predicated region fallthrough
CT: control target
= control target key end

     0   :  { %s122_s0 = inlined_call_operand.vmem [shape: f32[2,12,128], index: 0, kind: input, shape index: {}]   ;;  %s123_s1 = inlined_call_operand.hbm [shape: f32[2,24,128], index: 1, kind: output, shape index: {}]  }
   0x1   :  { %v9_v0 = vld [vmem:[%s122_s0] sm:$0xf]  ;;  %v10_v1 = vld [vmem:[%s122_s0 + $0x10] sm:$0xf]  ;;  %v14_v3 = vld [vmem:[%s122_s0 + $0x8] sm:$0xf] }
   0x2   :  { %v13_v2 = vld [vmem:[%s122_s0] sm:$0xff]  ;;  %11 = vst [vmem:[#allocation2] sm:$0xf] %v9_v0  ;;  %v15_v4 = vld [vmem:[%s122_s0 + $0x10] sm:$0xff]  ;;  %v16_v5 = vld [vmem:[%s122_s0 + $0x18] sm:$0xf] }
   0x3   :  { %12 = vst [vmem:[#allocation2 + $0x18] sm:$0xf] %v10_v1  ;;  %v21_v6 = vld [vmem:[%s122_s0 + $0x8] sm:$0xf] }
   0x4   :  { %17 = vst [vmem:[#allocation2 + $0x4] sm:$0xff] %v13_v2 }
   0x5   :  { %18 = vst [vmem:[#allocation2 + $0xc] sm:$0xf] %v14_v3 }
   0x6   :  { %6 = vsyncpa [#allocation3], 0  ;;  %s76_s20 = smov [#allocation2]   ;;  %s35_s24 = sshll.u32 %s123_s1, 4  ;;  %19 = vst [vmem:[#allocation2 + $0x1c] sm:$0xff] %v15_v4  ;;  %s36_s24 = int_to_ptr.hbm [resolvable:$true] %s35_s24 }
   0x7   :  { %s33_s21 = sshll.u32 %s76_s20, 4  ;;  %v22_v7 = vld [vmem:[%s122_s0 + $0x18] sm:$0xf]  ;;  %20 = vst [vmem:[#allocation2 + $0x24] sm:$0xf] %v16_v5  ;;  %s77_s1 = smov 128   ;;  %s34_s21 = int_to_ptr.vmem [resolvable:$true] %s33_s21 }
   0x8   :  { %v25_v8 = vld [vmem:[%s122_s0 + $0x8] sm:$0xf]  ;;  %23 = vst [vmem:[#allocation2 + $0x10] sm:$0xf] %v21_v6  ;;  %v26_v9 = vld [vmem:[%s122_s0 + $0x18] sm:$0xf] }
   0x9   :  { %24 = vst [vmem:[#allocation2 + $0x28] sm:$0xf] %v22_v7  ;;  %s78_s2 = smov 8  }
   0xa   :  { %27 = vst [vmem:[#allocation2 + $0x14] sm:$0xf] %v25_v8 }
   0xb   :  { %28 = vst [vmem:[#allocation2 + $0x2c] sm:$0xf] %v26_v9 }
   0xc   :  { %41 = dma.vmem_to_hbm [thread:$0]  %s34_s21, 768, %s36_s24, [#allocation3], %s77_s1, %s77_s1, %s78_s2  }
   0xd   :  { %74 = dma.done.wait [#allocation3], 768  }
   0xe   :  { %75 = vsyncadd [#allocation3], 4294966528 }
   0xf   :  { %46 = vsyncpa [#allocation3], 1 }

</bundles_post_ra>
